<compile_context>
chip_gen: v5e
topology: v5e:2x2
jax: 0.10.0
libtpu: 0.0.40
codegen_flags: <defaults>
</compile_context>

<pallas_src>
import jax
import jax.numpy as jnp
from jax.experimental import pallas as pl
from jax.experimental.pallas import tpu as pltpu

_LANE = 128
# ~2 MiB per block; with double-buffered input + output that is ~8 MiB VMEM,
# comfortably under the scoped-VMEM default on v5e/v6e/v7x while being large
# enough to amortize the ~0.35 us per-grid-step overhead (>=85% of HBM roofline).
_TARGET_BLOCK_BYTES = 2 * 1024 * 1024


def _copy_kernel(x_ref, o_ref):
    # Pure elementwise pass-through of the VMEM tile.
    o_ref[...] = x_ref[...]


def xcorrio_forward(x):
    """Pallas implementation of XCorrIONet.forward (identity).

    Accepts any tensor (e.g. NCHW [N, C, H, W]); returns an identical tensor
    with the same shape and dtype.
    """
    orig_shape = x.shape
    dtype = x.dtype
    itemsize = jnp.dtype(dtype).itemsize
    total = x.size
    if total == 0:
        return x

    # dtype-aware sublane granularity: 8 for 32-bit, 16 for bf16/f16, 32 for int8/fp8.
    sub = max(8, 32 // itemsize)

    # Lane-dense column width: the largest multiple of 128 (capped at 2048)
    # for which the flattened tensor needs no padding; else 128 with minimal
    # padding to an (sub, 128)-aligned slab.
    cols = _LANE
    for cand in (2048, 1024, 512, 256):
        if total % (sub * cand) == 0:
            cols = cand
            break

    pad_unit = sub * cols
    padded = pl.cdiv(total, pad_unit) * pad_unit

    flat = x.reshape(-1)
    if padded != total:
        flat = jnp.pad(flat, (0, padded - total))

    rows = padded // cols  # multiple of `sub` by construction

    # Row-block sized for ~_TARGET_BLOCK_BYTES, kept a multiple of `sub`.
    block_rows = (_TARGET_BLOCK_BYTES // (cols * itemsize)) // sub * sub
    block_rows = max(sub, min(block_rows, rows))
    grid = (pl.cdiv(rows, block_rows),)

    x2d = flat.reshape(rows, cols)

    out2d = pl.pallas_call(
        _copy_kernel,
        out_shape=jax.ShapeDtypeStruct((rows, cols), dtype),
        grid=grid,
        in_specs=[pl.BlockSpec((block_rows, cols), lambda i: (i, 0))],
        out_specs=pl.BlockSpec((block_rows, cols), lambda i: (i, 0)),
        # Identity op: let the output alias the input buffer so no extra
        # HBM traffic is required when XLA can honor the alias.
        input_output_aliases={0: 0},
        compiler_params=pltpu.CompilerParams(
            dimension_semantics=("parallel",),
        ),
        cost_estimate=pl.CostEstimate(
            flops=0,
            transcendentals=0,
            bytes_accessed=2 * padded * itemsize,
        ),
    )(x2d)

    out_flat = out2d.reshape(-1)
    if padded != total:
        out_flat = out_flat[:total]
    return out_flat.reshape(orig_shape)


if __name__ == "__main__":
    key = jax.random.PRNGKey(0)
    # Small deterministic NCHW input consistent with an I/O-example encoder
    # feeding conv/LSTM feature blocks: batch=2, channels=4, spatial=16x16.
    x = jax.random.normal(key, (2, 4, 16, 16), dtype=jnp.float32)

    y = xcorrio_forward(x)
    jax.block_until_ready(y)

    # Verify exact identity semantics (shape, dtype, values).
    assert y.shape == x.shape, (y.shape, x.shape)
    assert y.dtype == x.dtype, (y.dtype, x.dtype)
    assert bool(jnp.all(y == x))

    print("KERNEL_OK")
</pallas_src>

<mosaic_0001>
module attributes {stable_mosaic.version = 11 : i64} {
  func.func @_copy_kernel(%arg0: i32, %arg1: memref<8x256xf32, #tpu.memory_space<vmem>>, %arg2: memref<8x256xf32, #tpu.memory_space<vmem>>) attributes {dimension_semantics = [#tpu.dimension_semantics<parallel>], iteration_bounds = array<i64: 1>, scalar_prefetch = 0 : i64, scratch_operands = 0 : i64, tpu.core_type = #tpu.core_type<tc>, window_params = [{transform_indices = @transform_0, window_bounds = array<i64: 8, 256>}, {transform_indices = @transform_1, window_bounds = array<i64: 8, 256>}]} {
    %c0 = arith.constant 0 : index
    %c0_0 = arith.constant 0 : index
    %0 = vector.load %arg1[%c0, %c0_0] : memref<8x256xf32, #tpu.memory_space<vmem>>, vector<8x256xf32>
    %c0_1 = arith.constant 0 : index
    %c0_2 = arith.constant 0 : index
    %1 = vector.load %arg2[%c0_1, %c0_2] : memref<8x256xf32, #tpu.memory_space<vmem>>, vector<8x256xf32>
    tpu.vector_store %arg2[%c0_1, %c0_2], %0 {strides = array<i32>} : memref<8x256xf32, #tpu.memory_space<vmem>>, vector<8x256xf32>,
    return
  }
  func.func @transform_0(%arg0: i32) -> (i32, i32) {
    %c0_i32 = arith.constant 0 : i32
    %c0_i32_0 = arith.constant 0 : i32
    return %arg0, %c0_i32 : i32, i32
  }
  func.func @transform_1(%arg0: i32) -> (i32, i32) {
    %c0_i32 = arith.constant 0 : i32
    %c0_i32_0 = arith.constant 0 : i32
    return %arg0, %c0_i32 : i32, i32
  }
}

</mosaic_0001>

<bundles_post_ra>
// kernel: tpu_custom_call.1
= control target key start
LH: loop header
LB: loop body
LE: loop exit
PB: predicated region body
PF: predicated region fallthrough
CT: control target
= control target key end

     0   :  { %6 = vsyncpa [#allocation3], 0  ;;  %s116_s0 = inlined_call_operand.hbm [shape: f32[8,256], index: 0, kind: input, shape index: {}, may-alias: {0,1}]   ;;  %s117_s1 = inlined_call_operand.hbm [shape: f32[8,256], index: 1, kind: output, shape index: {}, may-alias: {0,1}]  }
   0x1   :  { %7 = vsyncpa [#allocation4], 0  ;;  %s13_s8 = sshll.u32 %s116_s0, 4  ;;  %s98_s9 = smov [#allocation2]   ;;  %s14_s8 = int_to_ptr.hbm [resolvable:$true] %s13_s8 }
   0x2   :  { %s15_s10 = sshll.u32 %s98_s9, 4  ;;  %s16_s10 = int_to_ptr.vmem [resolvable:$true] %s15_s10 }
   0x3   :  { %18 = dma.hbm_to_vmem [thread:$0]  %s14_s8, 256, %s16_s10, [#allocation3]  }
   0x4   :  { %94 = dma.done.wait [#allocation3], 256  }
   0x5   :  { %95 = vsyncadd [#allocation3], 4294967040  ;;  %s99_s11 = smov [#allocation5]   ;;  %s34_s15 = sshll.u32 %s117_s1, 4  ;;  %v23_v0 = vld [vmem:[#allocation2] sm:$0xff]  ;;  %v24_v1 = vld [vmem:[#allocation2 + $0x8] sm:$0xff]  ;;  %s35_s15 = int_to_ptr.hbm [resolvable:$true] %s34_s15 }
   0x6   :  { %s32_s12 = sshll.u32 %s99_s11, 4  ;;  %25 = vst [vmem:[#allocation5] sm:$0xff] %v23_v0  ;;  %s33_s12 = int_to_ptr.vmem [resolvable:$true] %s32_s12 }
   0x7   :  { %26 = vst [vmem:[#allocation5 + $0x8] sm:$0xff] %v24_v1 }
   0x8   :  { %37 = dma.vmem_to_hbm [thread:$0]  %s33_s12, 256, %s35_s15, [#allocation4]  }
   0x9   :  { %96 = dma.done.wait [#allocation4], 256  }
   0xa   :  { %97 = vsyncadd [#allocation4], 4294967040 }
   0xb   :  { %42 = vsyncpa [#allocation3], 1 }
   0xc   :  { %43 = vsyncpa [#allocation4], 1 }

</bundles_post_ra>
